<compile_context>
chip_gen: v7x
topology: tpu7x:2x2x1
jax: 0.10.0
libtpu: 0.0.40
codegen_flags: <defaults>
</compile_context>

<pallas_src>
import math
import functools

import jax
import jax.numpy as jnp
from jax.experimental import pallas as pl
from jax.experimental.pallas import tpu as pltpu


def _round_up(x: int, m: int) -> int:
    return ((x + m - 1) // m) * m


def _build_fixed_embedding_table(c_in: int, d_model: int) -> jnp.ndarray:
    """Reference-only: sinusoidal table identical to the PyTorch __init__."""
    position = jnp.arange(0, c_in, dtype=jnp.float32)[:, None]            # (c_in, 1)
    div_term = jnp.exp(
        jnp.arange(0, d_model, 2, dtype=jnp.float32) * -(math.log(10000.0) / d_model)
    )                                                                     # (d_model//2,)
    angles = position * div_term                                          # (c_in, d/2)
    w = jnp.zeros((c_in, d_model), dtype=jnp.float32)
    w = w.at[:, 0::2].set(jnp.sin(angles))
    w = w.at[:, 1::2].set(jnp.cos(angles)[:, : (d_model // 2)])
    return w


def _build_div_phase(d_model: int):
    """Per-column frequency div_term[j//2] and phase (0 even / pi/2 odd), both (1, d_model)."""
    j = jnp.arange(d_model, dtype=jnp.float32)
    two_k = 2.0 * jnp.floor(j * 0.5)                      # same exponent arg as PyTorch exp()
    div = jnp.exp(two_k * -(math.log(10000.0) / d_model))
    phase = jnp.where((jnp.arange(d_model) % 2) == 1,
                      jnp.float32(math.pi / 2.0), jnp.float32(0.0))
    return div.reshape(1, d_model), phase.reshape(1, d_model)


def _choose_tile_n(n: int, d_model: int) -> int:
    """Rows per grid step, sized from d_model against a VMEM double-buffer budget."""
    d_lanes = _round_up(d_model, 128)
    # Double-buffered f32 output rows (lane-padded) + double-buffered index
    # column (a (tile_n, 1) f32/int32 column also pads to 128 lanes in VMEM).
    bytes_per_row = 2 * 4 * (d_lanes + 128)
    budget = 12 * 1024 * 1024
    cap = max(8, min((budget // bytes_per_row) // 8 * 8, 8192))
    tile = min(cap, _round_up(n, 8))
    # v7x: a 1-step grid leaves the second TensorCore idle; split big single tiles.
    if tile >= n and n > 1024:
        tile = _round_up((n + 1) // 2, 8)
    return max(8, tile)


def _fixed_embedding_kernel(idx_ref, div_ref, phase_ref, out_ref):
    # idx_ref  : (tile_n, 1)      int32  -- flattened indices (one per output row)
    # div_ref  : (1, d_model)     f32    -- div_term[j // 2]
    # phase_ref: (1, d_model)     f32    -- 0 for even columns (sin), pi/2 for odd (cos)
    # out_ref  : (tile_n, d_model) f32   -- natural-layout output block
    idx = idx_ref[...].astype(jnp.float32)                    # (tile_n, 1)
    angles = idx * div_ref[...] + phase_ref[...]               # (tile_n, d_model)
    out_ref[...] = jnp.sin(angles).astype(out_ref.dtype)       # single EUP op per element


@functools.partial(jax.jit, static_argnames=("d_model",))
def fixed_embedding(x: jnp.ndarray, *, d_model: int) -> jnp.ndarray:
    """Pallas equivalent of FixedEmbedding.forward(x) -> emb(x).detach().

    x: integer indices of any shape. Returns x.shape + (d_model,) float32.
    """
    orig_shape = x.shape
    n = int(math.prod(orig_shape)) if orig_shape else 1

    tile_n = _choose_tile_n(n, d_model)
    n_pad = _round_up(n, tile_n)

    idx = x.reshape(n, 1).astype(jnp.int32)
    if n_pad != n:
        idx = jnp.pad(idx, ((0, n_pad - n), (0, 0)))           # pad with index 0 (sliced off)

    div_row, phase_row = _build_div_phase(d_model)

    cost = pl.CostEstimate(
        flops=2 * n_pad * d_model,                              # mul + add per element
        transcendentals=n_pad * d_model,                        # single sin per element
        bytes_accessed=n_pad * 4 + 2 * d_model * 4 + n_pad * d_model * 4,
    )

    out = pl.pallas_call(
        _fixed_embedding_kernel,
        out_shape=jax.ShapeDtypeStruct((n_pad, d_model), jnp.float32),
        grid_spec=pltpu.PrefetchScalarGridSpec(
            num_scalar_prefetch=0,
            grid=(n_pad // tile_n,),
            in_specs=[
                pl.BlockSpec((tile_n, 1), lambda i: (i, 0)),    # indices
                pl.BlockSpec((1, d_model), lambda i: (0, 0)),   # frequencies (resident)
                pl.BlockSpec((1, d_model), lambda i: (0, 0)),   # phases      (resident)
            ],
            out_specs=pl.BlockSpec((tile_n, d_model), lambda i: (i, 0)),
        ),
        compiler_params=pltpu.CompilerParams(
            dimension_semantics=("parallel",),
            vmem_limit_bytes=32 * 1024 * 1024,
        ),
        cost_estimate=cost,
    )(idx, div_row, phase_row)

    # Contiguous slice + reshape only (no transpose, no extra HBM pass).
    return out[:n].reshape(*orig_shape, d_model)


if __name__ == "__main__":
    # Small shapes: c_in=24 "categories" (e.g. hour-of-day), d_model=32,
    # input indices of shape (batch=2, seq=8).
    c_in, d_model = 24, 32
    batch, seq = 2, 8

    key = jax.random.PRNGKey(0)
    x = jax.random.randint(key, (batch, seq), 0, c_in, dtype=jnp.int32)

    out = fixed_embedding(x, d_model=d_model)
    out = jax.block_until_ready(out)

    # Pure-JAX reference: build the PyTorch-style table and gather.
    w = _build_fixed_embedding_table(c_in, d_model)
    ref = w[x]

    assert out.shape == (batch, seq, d_model)
    assert out.dtype == jnp.float32
    assert jnp.allclose(out, ref, atol=1e-5, rtol=1e-5), "mismatch vs reference gather"

    print("KERNEL_OK")
</pallas_src>

<mosaic_0001>
module attributes {stable_mosaic.version = 11 : i64} {
  func.func @_fixed_embedding_kernel(%arg0: i32, %arg1: memref<16x1xi32, #tpu.memory_space<vmem>>, %arg2: memref<1x32xf32, #tpu.memory_space<vmem>>, %arg3: memref<1x32xf32, #tpu.memory_space<vmem>>, %arg4: memref<16x32xf32, #tpu.memory_space<vmem>>) attributes {dimension_semantics = [#tpu.dimension_semantics<parallel>], iteration_bounds = array<i64: 1>, scalar_prefetch = 0 : i64, scratch_operands = 0 : i64, tpu.core_type = #tpu.core_type<tc>, window_params = [{transform_indices = @transform_0, window_bounds = array<i64: 16, 1>}, {pipeline_mode = #tpu.pipeline_mode<synchronous>, transform_indices = @transform_1, window_bounds = array<i64: 1, 32>}, {pipeline_mode = #tpu.pipeline_mode<synchronous>, transform_indices = @transform_2, window_bounds = array<i64: 1, 32>}, {transform_indices = @transform_3, window_bounds = array<i64: 16, 32>}]} {
    %c0 = arith.constant 0 : index
    %c0_0 = arith.constant 0 : index
    %0 = vector.load %arg1[%c0, %c0_0] : memref<16x1xi32, #tpu.memory_space<vmem>>, vector<16x1xi32>
    %1 = arith.sitofp %0 : vector<16x1xi32> to vector<16x1xf32>
    %c0_1 = arith.constant 0 : index
    %c0_2 = arith.constant 0 : index
    %2 = vector.load %arg2[%c0_1, %c0_2] : memref<1x32xf32, #tpu.memory_space<vmem>>, vector<1x32xf32>
    %3 = vector.broadcast %1 : vector<16x1xf32> to vector<16x32xf32>
    %4 = vector.broadcast %2 : vector<1x32xf32> to vector<16x32xf32>
    %5 = arith.mulf %3, %4 : vector<16x32xf32>
    %c0_3 = arith.constant 0 : index
    %c0_4 = arith.constant 0 : index
    %6 = vector.load %arg3[%c0_3, %c0_4] : memref<1x32xf32, #tpu.memory_space<vmem>>, vector<1x32xf32>
    %7 = vector.broadcast %6 : vector<1x32xf32> to vector<16x32xf32>
    %8 = arith.addf %5, %7 : vector<16x32xf32>
    %9 = math.sin %8 : vector<16x32xf32>
    %c0_5 = arith.constant 0 : index
    %c0_6 = arith.constant 0 : index
    %10 = vector.load %arg4[%c0_5, %c0_6] : memref<16x32xf32, #tpu.memory_space<vmem>>, vector<16x32xf32>
    tpu.vector_store %arg4[%c0_5, %c0_6], %9 {strides = array<i32>} : memref<16x32xf32, #tpu.memory_space<vmem>>, vector<16x32xf32>,
    return
  }
  func.func @transform_0(%arg0: i32) -> (i32, i32) {
    %c0_i32 = arith.constant 0 : i32
    %c0_i32_0 = arith.constant 0 : i32
    return %arg0, %c0_i32 : i32, i32
  }
  func.func @transform_1(%arg0: i32) -> (i32, i32) {
    %c0_i32 = arith.constant 0 : i32
    %c0_i32_0 = arith.constant 0 : i32
    %c0_i32_1 = arith.constant 0 : i32
    return %c0_i32, %c0_i32_0 : i32, i32
  }
  func.func @transform_2(%arg0: i32) -> (i32, i32) {
    %c0_i32 = arith.constant 0 : i32
    %c0_i32_0 = arith.constant 0 : i32
    %c0_i32_1 = arith.constant 0 : i32
    return %c0_i32, %c0_i32_0 : i32, i32
  }
  func.func @transform_3(%arg0: i32) -> (i32, i32) {
    %c0_i32 = arith.constant 0 : i32
    %c0_i32_0 = arith.constant 0 : i32
    return %arg0, %c0_i32 : i32, i32
  }
}

</mosaic_0001>

<bundles_post_ra>
// kernel: fixed_embedding.1
= control target key start
LH: loop header
LB: loop body
LE: loop exit
PB: predicated region body
PF: predicated region fallthrough
CT: control target
= control target key end

     0   :  { %v335_v2 = vmov 0   ;;  %s459_s0 = inlined_call_operand.vmem [shape: s32[16,1], index: 0, kind: input, shape index: {}]   ;;  %s460_s1 = inlined_call_operand.vmem [shape: f32[1,32], index: 1, kind: input, shape index: {}]   ;;  %s461_s2 = inlined_call_operand.vmem [shape: f32[1,32], index: 2, kind: input, shape index: {}]   ;;  %s462_s3 = inlined_call_operand.hbm [shape: f32[16,32], index: 3, kind: output, shape index: {}]  }
   0x1   :  { %v15_v0 = vld [vmem:[%s459_s0] sm:$0xff]  ;;  %v16_v1 = vld [vmem:[%s459_s0 + $0x8] sm:$0xff]  ;;  %302 = vset.pattern.permute.xlu0 %v335_v2 }
   0x2   :  { %v17_v3 = vcvt.s32.f32 %v15_v0  ;;  %v18_v4 = vcvt.s32.f32 %v16_v1 }
   0x4   :  { %22 = vperm.xlu0 %302, %v17_v3  }
   0x5   :  { %8 = vsyncpa [#allocation3], 0  ;;  %v274_v5 = vld [vmem:[%s460_s1] ss:$0 sm:$0xff]  ;;  %v336_v29 = vmov 683565275  }
   0x6   :  { %v275_v6 = vld [vmem:[%s461_s2] ss:$0 sm:$0xff]  ;;  %v337_v33 = vmov 2475754826   ;;  %v338_v35 = vmov 2131351028  }
   0x7   :  { %v339_v37 = vmov 2102212464   ;;  %v340_v39 = vmov 920167782   ;;  %v341_v46 = vmov 1326507024  }
   0x8   :  { %27 = vperm.xlu0 %302, %v18_v4   ;;  %s342_s0 = smov [#allocation2]  }
   0x9   :  { %s263_s1 = sshll.u32 %s342_s0, 4  ;;  %s264_s1 = int_to_ptr.vmem [resolvable:$true] %s263_s1 }
   0xa   :  { %s311_s2 = scalar_lea.vmem %s264_s1, 256  ;;  %p316_p1 = scmp.lt.s32.totalorder %s264_s1, %s264_s1 }
   0xb   :  { %p312_p0 = scmp.ne.s32.totalorder %s264_s1, %s311_s2  ;;  %p317_p2 = scmp.lt.s32.totalorder %s311_s2, %s311_s2 }
   0xd   :  { %p318_p3 = por %p317_p2, %p316_p1 }
   0xf   :  { %p319_p4 = pnand %p318_p3, %p312_p0 }
  0x83   :  { %v23_v7 = vpop.permute.xlu0 %22 }
  0x84   :  { %v36_v8 = vmul.f32 %v274_v5, %v23_v7 }
  0x86   :  { %v377_v9 = vadd.f32 %v275_v6, %v36_v8 }
  0x87   :  { %v28_v10 = vpop.permute.xlu0 %27 }
  0x88   :  { %v47_v11 = vand.u32 2147483647, %v377_v9  ;;  %v50_v12 = vand.u32 2139095040, %v377_v9  ;;  %v37_v13 = vmul.f32 %v274_v5, %v28_v10  ;;  %vm49_vm14 = vcmp.lt.s32.totalorder %v377_v9, 0 }
  0x8a   :  { %v51_v14 = vshrl.u32 %v50_v12, 23  ;;  %v381_v15 = vadd.f32 %v275_v6, %v37_v13  ;;  %v54_v16 = vand.u32 8388607, %v47_v11  ;;  %vm48_vm15 = vcmp.le.f32.partialorder %v47_v11, 0.7853982 }
  0x8c   :  { %v276_v17 = vadd.s32 4294967169, %v51_v14  ;;  %v154_v18 = vand.u32 2139095040, %v381_v15  ;;  %v55_v20 = vor.u32 8388608, %v54_v16  ;;  %v151_v22 = vand.u32 2147483647, %v381_v15 }
  0x8e   :  { %v57_v19 = vadd.s32 1, %v276_v17  ;;  %v155_v21 = vshrl.u32 %v154_v18, 23  ;;  %v387_v27 = vshll.u32 %v55_v20, 8  ;;  %v158_v31 = vand.u32 8388607, %v151_v22 }
  0x90   :  { %vm58_vm0 = vcmp.gt.s32.totalorder %v57_v19, 0  ;;  %v280_v24 = vadd.s32 4294967169, %v155_v21  ;;  %v159_v61 = vor.u32 8388608, %v158_v31 }
  0x91   :  { %v59_v23 = vsel %vm58_vm0, %v57_v19, 0  ;;  %vm153_vm0 = vcmp.lt.s32.totalorder %v381_v15, 0 }
  0x92   :  { %v60_v25 = vshrl.u32 %v59_v23, 5  ;;  %v61_v26 = vand.u32 31, %v59_v23  ;;  %v161_v32 = vadd.s32 1, %v280_v24  ;;  %v199_v12 = vshll.u32 %v159_v61, 8 }
  0x94   :  { %v62_v28 = vsub.s32 32, %v61_v26  ;;  %v64_v30 = vshll.u32 %v336_v29, %v61_v26  ;;  %v67_v34 = vshll.u32 %v337_v33, %v61_v26  ;;  %v70_v36 = vshll.u32 %v338_v35, %v61_v26 }
  0x95   :  { %v73_v38 = vshll.u32 %v339_v37, %v61_v26  ;;  %v76_v40 = vshll.u32 %v340_v39, %v61_v26  ;;  %vm79_vm1 = vcmp.lt.s32.totalorder %v60_v25, 1  ;;  %vm81_vm2 = vcmp.lt.s32.totalorder %v60_v25, 3 }
  0x96   :  { %v65_v41 = vshrl.u32 %v337_v33, %v62_v28  ;;  %v68_v42 = vshrl.u32 %v338_v35, %v62_v28  ;;  %v71_v43 = vshrl.u32 %v339_v37, %v62_v28  ;;  %v63_v44 = vshrl.u32 %v336_v29, %v62_v28 }
  0x97   :  { %v74_v45 = vshrl.u32 %v340_v39, %v62_v28  ;;  %v77_v47 = vshrl.u32 %v341_v46, %v62_v28  ;;  %vm162_vm3 = vcmp.gt.s32.totalorder %v161_v32, 0  ;;  %vm82_vm4 = vcmp.lt.s32.totalorder %v60_v25, 4 }
  0x98   :  { %v66_v48 = vor.u32 %v65_v41, %v64_v30  ;;  %v69_v49 = vor.u32 %v68_v42, %v67_v34  ;;  %v72_v50 = vor.u32 %v71_v43, %v70_v36  ;;  %v163_v53 = vsel %vm162_vm3, %v161_v32, 0 }
  0x99   :  { %v75_v51 = vor.u32 %v74_v45, %v73_v38  ;;  %v78_v52 = vor.u32 %v77_v47, %v76_v40  ;;  %vm80_vm5 = vcmp.lt.s32.totalorder %v60_v25, 2  ;;  %v165_v0 = vand.u32 31, %v163_v53 }
  0x9a   :  { %v83_v54 = vsel %vm79_vm1, %v63_v44, %v66_v48  ;;  %v84_v55 = vsel %vm82_vm4, %v72_v50, 2102212464  ;;  %v87_v56 = vsel %vm79_vm1, %v66_v48, %v69_v49  ;;  %v91_v57 = vsel %vm79_vm1, %v69_v49, %v72_v50 }
  0x9b   :  { %v85_v58 = vsel %vm81_vm2, %v69_v49, %v84_v55  ;;  %v88_v59 = vsel %vm82_vm4, %v75_v51, 920167782  ;;  %v92_v60 = vsel %vm82_vm4, %v78_v52, 1326507024  ;;  %v164_v8 = vshrl.u32 %v163_v53, 5 }
  0x9c   :  { %v89_v62 = vsel %vm81_vm2, %v72_v50, %v88_v59  ;;  %v93_v63 = vsel %vm81_vm2, %v75_v51, %v92_v60  ;;  %v86_v1 = vsel %vm80_vm5, %v83_v54, %v85_v58  ;;  %v166_v10 = vsub.s32 32, %v165_v0 }
  0x9d   :  { %v90_v2 = vsel %vm80_vm5, %v87_v56, %v89_v62  ;;  %v94_v3 = vsel %vm80_vm5, %v91_v57, %v93_v63  ;;  %v102_v13 = vmul.u32 %v387_v27, %v86_v1  ;;  %v168_v14 = vshll.u32 %v336_v29, %v165_v0 }
  0x9e   :  { %v400_v4 = vmul.u32.u64.low %v387_v27, %v94_v3  ;;  %v401_v5 = vmul.u32.u64.high %v387_v27, %v94_v3, %v400_v4  ;;  %v404_v6 = vmul.u32.u64.low %v387_v27, %v90_v2  ;;  %v405_v7 = vmul.u32.u64.high %v387_v27, %v90_v2, %v404_v6 }
  0x9f   :  { %v171_v16 = vshll.u32 %v337_v33, %v165_v0  ;;  %v174_v17 = vshll.u32 %v338_v35, %v165_v0  ;;  %v169_v18 = vshrl.u32 %v337_v33, %v166_v10  ;;  %v172_v19 = vshrl.u32 %v338_v35, %v166_v10 }
  0xa0   :  { %v175_v20 = vshrl.u32 %v339_v37, %v166_v10  ;;  %v177_v21 = vshll.u32 %v339_v37, %v165_v0  ;;  %vm104_vm6 = vc.u32 %v401_v5, %v404_v6  ;;  %v105_v23 = vadd.s32 1, %v405_v7 }
  0xa1   :  { %v178_v24 = vshrl.u32 %v340_v39, %v166_v10  ;;  %v180_v25 = vshll.u32 %v340_v39, %v165_v0  ;;  %v170_v26 = vor.u32 %v169_v18, %v168_v14  ;;  %v173_v28 = vor.u32 %v172_v19, %v171_v16 }
  0xa2   :  { %v176_v30 = vor.u32 %v175_v20, %v174_v17  ;;  %v181_v31 = vshrl.u32 %v341_v46, %v166_v10  ;;  %v106_v27 = vsel %vm104_vm6, %v105_v23, %v405_v7  ;;  %vm183_vm7 = vcmp.lt.s32.totalorder %v164_v8, 1 }
  0xa3   :  { %v179_v32 = vor.u32 %v178_v24, %v177_v21  ;;  %vm186_vm8 = vcmp.lt.s32.totalorder %v164_v8, 4  ;;  %v107_v33 = vadd.s32 %v106_v27, %v102_v13  ;;  %vm185_vm9 = vcmp.lt.s32.totalorder %v164_v8, 3 }
  0xa4   :  { %v182_v34 = vor.u32 %v181_v31, %v180_v25  ;;  %v188_v35 = vsel %vm186_vm8, %v176_v30, 2102212464  ;;  %v167_v36 = vshrl.u32 %v336_v29, %v166_v10  ;;  %v191_v37 = vsel %vm183_vm7, %v170_v26, %v173_v28 }
  0xa5   :  { %v192_v38 = vsel %vm186_vm8, %v179_v32, 920167782  ;;  %v195_v40 = vsel %vm183_vm7, %v173_v28, %v176_v30  ;;  %v108_v41 = vadd.s32 536870912, %v107_v33  ;;  %vm184_vm10 = vcmp.lt.s32.totalorder %v164_v8, 2 }
  0xa6   :  { %v193_v39 = vsel %vm185_vm9, %v176_v30, %v192_v38  ;;  %v196_v42 = vsel %vm186_vm8, %v182_v34, 1326507024  ;;  %v187_v43 = vsel %vm183_vm7, %v167_v36, %v170_v26  ;;  %v189_v44 = vsel %vm185_vm9, %v173_v28, %v188_v35 }
  0xa7   :  { %v194_v45 = vsel %vm184_vm10, %v191_v37, %v193_v39  ;;  %v197_v46 = vsel %vm185_vm9, %v179_v32, %v196_v42  ;;  %v109_v47 = vshrl.u32 %v108_v41, 30  ;;  %v190_v53 = vsel %vm184_vm10, %v187_v43, %v189_v44 }
  0xa8   :  { %v198_v48 = vsel %vm184_vm10, %v195_v40, %v197_v46  ;;  %v415_v49 = vmul.u32.u64.low %v199_v12, %v194_v45  ;;  %v416_v50 = vmul.u32.u64.high %v199_v12, %v194_v45, %v415_v49  ;;  %v206_v56 = vmul.u32 %v199_v12, %v190_v53 }
  0xa9   :  { %v418_v51 = vmul.u32.u64.low %v199_v12, %v198_v48  ;;  %v419_v52 = vmul.u32.u64.high %v199_v12, %v198_v48, %v418_v51  ;;  %v110_v29 = vshll.u32 %v109_v47, 30  ;;  %v103_v4 = vadd.s32 %v404_v6, %v401_v5 }
  0xaa   :  { %v209_v55 = vadd.s32 1, %v416_v50  ;;  %v133_v26 = vsub.s32 4, %v109_v47  ;;  %vm434_vm1 = vcmp.le.f32.partialorder %v151_v22, 0.7853982  ;;  %vm255_vm5 = vcmask 261120  }
  0xab   :  { %v111_v54 = vsub.s32 %v107_v33, %v110_v29  ;;  %vm208_vm11 = vc.u32 %v419_v52, %v415_v49  ;;  %v207_v5 = vadd.s32 %v415_v49, %v419_v52  ;;  %vm139_vm6 = vweird.f32 %v377_v9 }
  0xac   :  { %v210_v58 = vsel %vm208_vm11, %v209_v55, %v416_v50  ;;  %v134_v35 = vsel %vm49_vm14, %v133_v26, %v109_v47  ;;  %vm243_vm10 = vweird.f32 %v381_v15 }
  0xad   :  { %v113_v57 = vsub.s32 0, %v111_v54  ;;  %v211_v59 = vadd.s32 %v210_v58, %v206_v56  ;;  %v136_v41 = vsel %vm48_vm15, 0, %v134_v35 }
  0xae   :  { %v140_v43 = vadd.s32 3, %v136_v41 }
  0xaf   :  { %v277_v60 = vmin.u32 %v113_v57, %v111_v54  ;;  %v212_v61 = vadd.s32 536870912, %v211_v59 }
  0xb0   :  { %v141_v48 = vand.u32 3, %v140_v43 }
  0xb1   :  { %v115_v62 = vclz %v277_v60  ;;  %v213_v63 = vshrl.u32 %v212_v61, 30 }
  0xb2   :  { %vm146_vm2 = vcmp.eq.s32.totalorder %v141_v48, 2  ;;  %vm143_vm3 = vcmp.eq.s32.totalorder %v141_v48, 0  ;;  %vm142_vm4 = vcmp.lt.s32.totalorder %v141_v48, 2 }
  0xb3   :  { %v278_v0 = vadd.s32 4294967294, %v115_v62  ;;  %v214_v1 = vshll.u32 %v213_v63, 30  ;;  %v237_v45 = vsub.s32 4, %v213_v63 }
  0xb5   :  { %vm279_vm12 = vcmp.lt.s32.totalorder %v278_v0, 0  ;;  %v215_v3 = vsub.s32 %v211_v59, %v214_v1  ;;  %v238_v49 = vsel %vm153_vm0, %v237_v45, %v213_v63 }
  0xb6   :  { %v118_v2 = vsel %vm279_vm12, 0, %v278_v0 }
  0xb7   :  { %v119_v7 = vsub.s32 32, %v118_v2  ;;  %v123_v8 = vsub.s32 4294967266, %v118_v2  ;;  %v217_v10 = vsub.s32 0, %v215_v3  ;;  %v120_v12 = vshll.u32 %v111_v54, %v118_v2 }
  0xb8   :  { %v240_v54 = vsel %vm434_vm1, 0, %v238_v49 }
  0xb9   :  { %v121_v13 = vshrl.u32 %v103_v4, %v119_v7  ;;  %v124_v14 = vadd.s32 127, %v123_v8  ;;  %v281_v16 = vmin.u32 %v217_v10, %v215_v3  ;;  %v244_v57 = vadd.s32 3, %v240_v54 }
  0xbb   :  { %v122_v17 = vor.u32 %v121_v13, %v120_v12  ;;  %v125_v18 = vshll.u32 %v124_v14, 23  ;;  %v219_v19 = vclz %v281_v16  ;;  %v245_v59 = vand.u32 3, %v244_v57 }
  0xbd   :  { %v126_v20 = vor.u32 4788187, %v125_v18  ;;  %v282_v21 = vadd.s32 4294967294, %v219_v19  ;;  %v129_v24 = vcvt.s32.f32 %v122_v17  ;;  %vm250_vm7 = vcmp.eq.s32.totalorder %v245_v59, 2 }
  0xbe   :  { %vm247_vm8 = vcmp.eq.s32.totalorder %v245_v59, 0  ;;  %vm246_vm9 = vcmp.lt.s32.totalorder %v245_v59, 2 }
  0xbf   :  { %v127_v23 = vand.u32 2147483647, %v126_v20  ;;  %vm283_vm13 = vcmp.lt.s32.totalorder %v282_v21, 0 }
  0xc0   :  { %v222_v28 = vsel %vm283_vm13, 0, %v282_v21 }
  0xc1   :  { %v130_v25 = vmul.f32 %v129_v24, %v127_v23  ;;  %v223_v6 = vsub.s32 32, %v222_v28  ;;  %v227_v30 = vsub.s32 4294967266, %v222_v28  ;;  %v224_v27 = vshll.u32 %v215_v3, %v222_v28 }
  0xc3   :  { %v131_v31 = vxor.u32 2147483648, %v130_v25  ;;  %v225_v32 = vshrl.u32 %v207_v5, %v223_v6  ;;  %v228_v33 = vadd.s32 127, %v227_v30 }
  0xc5   :  { %v132_v34 = vsel %vm49_vm14, %v131_v31, %v130_v25  ;;  %v226_v37 = vor.u32 %v225_v32, %v224_v27  ;;  %v229_v38 = vshll.u32 %v228_v33, 23 }
  0xc6   :  { %v135_v36 = vsel %vm48_vm15, %v377_v9, %v132_v34 }
  0xc7   :  { %303 = vcosq.f32 %v135_v36  ;;  %v230_v40 = vor.u32 4788187, %v229_v38  ;;  %v233_v42 = vcvt.s32.f32 %v226_v37 }
  0xc8   :  { %305 = vsinq.f32 %v135_v36 }
  0xc9   :  { %v231_v39 = vand.u32 2147483647, %v230_v40 }
  0xcb   :  { %v234_v44 = vmul.f32 %v233_v42, %v231_v39 }
  0xcd   :  { %v235_v46 = vxor.u32 2147483648, %v234_v44 }
  0xcf   :  { %v236_v47 = vsel %vm153_vm0, %v235_v46, %v234_v44 }
  0xd0   :  { %v239_v51 = vsel %vm434_vm1, %v381_v15, %v236_v47 }
  0xd1   :  { %v304_v50 = vpop.eup %303  ;;  %307 = vcosq.f32 %v239_v51 }
  0xd2   :  { %v306_v52 = vpop.eup %305  ;;  %v147_v29 = vxor.u32 2147483648, %v304_v50  ;;  %309 = vsinq.f32 %v239_v51 }
  0xd3   :  { %v144_v53 = vxor.u32 2147483648, %v306_v52 }
  0xd4   :  { %v148_v22 = vsel %vm146_vm2, %v147_v29, %v306_v52 }
  0xd5   :  { %v145_v55 = vsel %vm143_vm3, %v304_v50, %v144_v53 }
  0xd6   :  { %v149_v56 = vsel %vm142_vm4, %v145_v55, %v148_v22 }
  0xd7   :  { %v150_v58 = vsel %vm139_vm6, nan, %v149_v56 }
  0xd8   :  { %256 = vst.msk [vmem:[#allocation2] sm:$0xff] %vm255_vm5, %v150_v58 }
  0xdb   :  { %v308_v60 = vpop.eup %307 }
  0xdc   :  { %v310_v61 = vpop.eup %309  ;;  %v251_v62 = vxor.u32 2147483648, %v308_v60 }
  0xdd   :  { %v248_v63 = vxor.u32 2147483648, %v310_v61 }
  0xde   :  { %v252_v0 = vsel %vm250_vm7, %v251_v62, %v310_v61 }
  0xdf   :  { %v249_v1 = vsel %vm247_vm8, %v308_v60, %v248_v63 }
  0xe0   :  { %v253_v9 = vsel %vm246_vm9, %v249_v1, %v252_v0 }
  0xe1   :  { %v254_v2 = vsel %vm243_vm10, nan, %v253_v9 }
  0xe2   :  { %257 = vst.msk [vmem:[#allocation2 + $0x8] sm:$0xff] %vm255_vm5, %v254_v2 }
  0xe3   :  { %322 = shalt.err (!%p319_p4)
}
  0xe4   :  { %s323_s22 = scalar_lea.hbm %s462_s3, 256 }
  0xe5   :  { %p324_p5 = scmp.ne.s32.totalorder %s462_s3, %s323_s22  ;;  %p327_p6 = scmp.lt.u32.totalorder %s323_s22, %s462_s3 }
  0xe7   :  { %p329_p7 = pnand %p327_p6, %p324_p5 }
  0xe9   :  { %332 = shalt.err (!%p329_p7)
}
  0xea   :  { %s343_s27 = smov 128   ;;  %s344_s28 = smov 8  }
  0xeb   :  { %269 = dma.vmem_to_hbm [thread:$0]  %s264_s1, 256, %s462_s3, [#allocation3], %s343_s27, %s343_s27, %s344_s28  }
  0xec   :  { %333 = dma.done.wait [#allocation3], 256  }
  0xed   :  { %334 = vsyncadd [#allocation3], 4294967040 }
  0xee   :  { %273 = vsyncpa [#allocation3], 1 }

</bundles_post_ra>
